<compile_context>
chip_gen: v7x
topology: tpu7x:2x2x1
jax: 0.10.0
libtpu: 0.0.40
codegen_flags: <defaults>
</compile_context>

<pallas_src>
import numpy as np
import jax
import jax.numpy as jnp
from jax.experimental import pallas as pl
from jax.experimental.pallas import tpu as pltpu


# ----------------------------------------------------------------------------
# Deterministic parameter init (mimics torch.nn.init.orthogonal_ + constant bias)
# ----------------------------------------------------------------------------
def orthogonal_init(key, out_features, in_features, gain):
    """Orthogonal init like torch.nn.init.orthogonal_ on a (out, in) weight."""
    rows, cols = out_features, in_features
    a = jax.random.normal(key, (max(rows, cols), min(rows, cols)), dtype=jnp.float32)
    q, r = jnp.linalg.qr(a)
    d = jnp.sign(jnp.diagonal(r))
    q = q * d[None, :]
    if rows < cols:
        q = q.T
    w = q[:rows, :cols]
    return gain * w  # shape (out, in)


def make_value_params(state_dim, key):
    k1, k2, k3 = jax.random.split(key, 3)
    std = float(np.sqrt(2.0))
    # torch Linear weight is (out, in); store transposed (in, out) for layers 1-2.
    w1 = orthogonal_init(k1, 64, state_dim, std).T          # (state_dim, 64)
    b1 = jnp.zeros((1, 64), dtype=jnp.float32)
    w2 = orthogonal_init(k2, 64, 64, std).T                  # (64, 64)
    b2 = jnp.zeros((1, 64), dtype=jnp.float32)
    w3t = orthogonal_init(k3, 1, 64, std)                    # (1, 64) row vector
    b3 = jnp.zeros((1, 1), dtype=jnp.float32)
    return (w1, b1, w2, b2, w3t, b3)


# ----------------------------------------------------------------------------
# Fused MLP kernel: x @ W1 + b1 -> tanh -> @ W2 + b2 -> tanh -> (VPU dot w3) + b3
# ----------------------------------------------------------------------------
def value_mlp_kernel(x_ref, w1_ref, b1_ref, w2_ref, b2_ref, w3t_ref, b3_ref, o_ref):
    x = x_ref[...]
    # Optional bf16 MXU path: cast in-kernel (hides under MXU work; avoids an extra
    # wrapper-side HBM pass over x).  Static trace-time branch on the weight dtype.
    if w1_ref.dtype == jnp.bfloat16:
        x = x.astype(jnp.bfloat16)
    # Layers 1-2 on the MXU with f32 accumulation; biases/tanh stay in f32.
    h1 = jnp.tanh(
        jnp.dot(x, w1_ref[...], preferred_element_type=jnp.float32) + b1_ref[...]
    )
    h2 = jnp.tanh(
        jnp.dot(h1.astype(w2_ref.dtype), w2_ref[...],
                preferred_element_type=jnp.float32) + b2_ref[...]
    )
    # Layer 3 (64 -> 1): VPU multiply + XLU lane reduction, no MXU push for N=1.
    v = jnp.sum(h2 * w3t_ref[...], axis=-1, keepdims=True) + b3_ref[...]
    # (tile_b, 1) output lowers to masked stores; accepted knowingly (tiny bytes,
    # amortized by the large tile).  Lane-dense rewrite is profile-gated.
    o_ref[...] = v.astype(o_ref.dtype)


# ----------------------------------------------------------------------------
# Tiling policy
# ----------------------------------------------------------------------------
_VMEM_TILE_BUDGET = 20 * 1024 * 1024   # batch-tile working set budget (all gens)
_VMEM_LIMIT_BYTES = 40 * 1024 * 1024   # raised scoped-VMEM limit (< v7x 64 MiB phys)
_MIN_ROWS_PER_SPLIT = 256              # split across v7x's 2 TCs only if each gets >= this


def _cdiv(a, b):
    return -(-a // b)


def _round_up(a, m):
    return _cdiv(a, m) * m


def _compute_tiling(batch, state_dim, x_itemsize):
    """Pick (tile_b, n_tiles).

    Biggest tile that fits the VMEM budget; >= 2 tiles when a v7x megacore split is
    worthwhile; minimal tail waste (partial last block instead of padding).
    """
    # per-row VMEM: double-buffered x tile + ~4 activation temps (64 f32) + output.
    per_row = 2 * state_dim * x_itemsize + 4 * 64 * 4 + 2 * 4
    cap = max(8, (_VMEM_TILE_BUDGET // per_row) // 8 * 8)
    n_tiles = _cdiv(batch, cap)
    if n_tiles == 1:
        if batch >= 2 * _MIN_ROWS_PER_SPLIT:
            n_tiles = 2                 # give both v7x TensorCores work
        else:
            return batch, 1             # single full-extent block; no 8-alignment needed
    tile_b = _round_up(_cdiv(batch, n_tiles), 8)
    n_tiles = _cdiv(batch, tile_b)
    return tile_b, n_tiles


def value_forward(x, params, *, use_bf16_matmul=False):
    """x: (batch, state_dim) float32 -> (batch,) float32."""
    w1, b1, w2, b2, w3t, b3 = params
    batch, state_dim = x.shape
    assert w1.shape[0] == state_dim

    if use_bf16_matmul:
        # Only the tiny, VMEM-resident weights are cast in the wrapper; x is cast
        # inside the kernel so its HBM traffic stays a single f32 read.
        w1 = w1.astype(jnp.bfloat16)
        w2 = w2.astype(jnp.bfloat16)

    tile_b, n_tiles = _compute_tiling(batch, state_dim, x.dtype.itemsize)

    def resident(a):
        # Constant index_map -> operand stays VMEM-resident, never re-DMA'd.
        return pl.BlockSpec(a.shape, lambda i: (0,) * a.ndim)

    bytes_w = sum(int(np.prod(a.shape)) * a.dtype.itemsize
                  for a in (w1, b1, w2, b2, w3t, b3))
    cost = pl.CostEstimate(
        flops=2 * batch * (state_dim * 64 + 64 * 64 + 64),
        transcendentals=2 * batch * 64,
        bytes_accessed=batch * state_dim * x.dtype.itemsize + bytes_w + batch * 4,
    )

    out = pl.pallas_call(
        value_mlp_kernel,
        out_shape=jax.ShapeDtypeStruct((batch, 1), jnp.float32),
        grid=(n_tiles,),
        in_specs=[
            pl.BlockSpec((tile_b, state_dim), lambda i: (i, 0)),  # pipelined x tiles
            resident(w1), resident(b1), resident(w2), resident(b2),
            resident(w3t), resident(b3),
        ],
        out_specs=pl.BlockSpec((tile_b, 1), lambda i: (i, 0)),
        compiler_params=pltpu.CompilerParams(
            dimension_semantics=("parallel",),     # megacore sharding on v7x
            vmem_limit_bytes=_VMEM_LIMIT_BYTES,
        ),
        cost_estimate=cost,
    )(x, w1, b1, w2, b2, w3t, b3)

    # .squeeze(1) from the PyTorch forward.  Rows of any partial last block beyond
    # `batch` were never written to HBM (masked writes), so nothing to slice off.
    return out[:, 0]


# ----------------------------------------------------------------------------
# Pure-JAX reference for sanity checking
# ----------------------------------------------------------------------------
def value_forward_ref(x, params):
    w1, b1, w2, b2, w3t, b3 = params
    h1 = jnp.tanh(x @ w1 + b1)
    h2 = jnp.tanh(h1 @ w2 + b2)
    v = h2 @ w3t.T + b3
    return v[:, 0]


if __name__ == "__main__":
    key = jax.random.PRNGKey(0)
    k_param, k_x1, k_x2 = jax.random.split(key, 3)

    state_dim = 32
    params = make_value_params(state_dim, k_param)

    # Small shape consistent with the module.
    batch = 8
    x = jax.random.normal(k_x1, (batch, state_dim), dtype=jnp.float32)
    out = jax.block_until_ready(value_forward(x, params))
    ref = value_forward_ref(x, params)
    np.testing.assert_allclose(np.asarray(out), np.asarray(ref), rtol=1e-5, atol=1e-5)
    assert out.shape == (batch,)

    # Ragged (non-multiple-of-8) batch exercises the full-extent single-block path.
    batch2 = 37
    x2 = jax.random.normal(k_x2, (batch2, state_dim), dtype=jnp.float32)
    out2 = jax.block_until_ready(value_forward(x2, params))
    ref2 = value_forward_ref(x2, params)
    np.testing.assert_allclose(np.asarray(out2), np.asarray(ref2), rtol=1e-5, atol=1e-5)
    assert out2.shape == (batch2,)

    # Larger batch exercises the multi-tile / partial-last-block path (and the
    # v7x two-core split when n_tiles >= 2).
    batch3 = 600
    x3 = jax.random.normal(k_x2, (batch3, state_dim), dtype=jnp.float32)
    out3 = jax.block_until_ready(value_forward(x3, params))
    ref3 = value_forward_ref(x3, params)
    np.testing.assert_allclose(np.asarray(out3), np.asarray(ref3), rtol=1e-5, atol=1e-5)
    assert out3.shape == (batch3,)

    # bf16 matmul-input fast path (looser tolerance: x/weights quantized to bf16).
    out_bf16 = jax.block_until_ready(value_forward(x2, params, use_bf16_matmul=True))
    np.testing.assert_allclose(np.asarray(out_bf16), np.asarray(ref2),
                               rtol=5e-2, atol=5e-2)

    print("KERNEL_OK")
</pallas_src>

<mosaic_0001>
module attributes {stable_mosaic.version = 11 : i64} {
  func.func @value_mlp_kernel(%arg0: i32, %arg1: memref<8x32xf32, #tpu.memory_space<vmem>>, %arg2: memref<32x64xf32, #tpu.memory_space<vmem>>, %arg3: memref<1x64xf32, #tpu.memory_space<vmem>>, %arg4: memref<64x64xf32, #tpu.memory_space<vmem>>, %arg5: memref<1x64xf32, #tpu.memory_space<vmem>>, %arg6: memref<1x64xf32, #tpu.memory_space<vmem>>, %arg7: memref<1x1xf32, #tpu.memory_space<vmem>>, %arg8: memref<8x1xf32, #tpu.memory_space<vmem>>) attributes {dimension_semantics = [#tpu.dimension_semantics<parallel>], iteration_bounds = array<i64: 1>, scalar_prefetch = 0 : i64, scratch_operands = 0 : i64, tpu.core_type = #tpu.core_type<tc>, window_params = [{transform_indices = @transform_0, window_bounds = array<i64: 8, 32>}, {pipeline_mode = #tpu.pipeline_mode<synchronous>, transform_indices = @transform_1, window_bounds = array<i64: 32, 64>}, {pipeline_mode = #tpu.pipeline_mode<synchronous>, transform_indices = @transform_2, window_bounds = array<i64: 1, 64>}, {pipeline_mode = #tpu.pipeline_mode<synchronous>, transform_indices = @transform_3, window_bounds = array<i64: 64, 64>}, {pipeline_mode = #tpu.pipeline_mode<synchronous>, transform_indices = @transform_4, window_bounds = array<i64: 1, 64>}, {pipeline_mode = #tpu.pipeline_mode<synchronous>, transform_indices = @transform_5, window_bounds = array<i64: 1, 64>}, {pipeline_mode = #tpu.pipeline_mode<synchronous>, transform_indices = @transform_6, window_bounds = array<i64: 1, 1>}, {transform_indices = @transform_7, window_bounds = array<i64: 8, 1>}]} {
    %c0 = arith.constant 0 : index
    %c0_0 = arith.constant 0 : index
    %0 = vector.load %arg1[%c0, %c0_0] : memref<8x32xf32, #tpu.memory_space<vmem>>, vector<8x32xf32>
    %c0_1 = arith.constant 0 : index
    %c0_2 = arith.constant 0 : index
    %1 = vector.load %arg2[%c0_1, %c0_2] : memref<32x64xf32, #tpu.memory_space<vmem>>, vector<32x64xf32>
    %cst = arith.constant dense<0.000000e+00> : vector<8x64xf32>
    %2 = tpu.matmul %0, %1, %cst {dimension_numbers = #tpu.dot_dimension_numbers<[1], [0], [0], [1], [0, 0, 1, 1], [], []>} : vector<8x32xf32>, vector<32x64xf32>, vector<8x64xf32> -> vector<8x64xf32>
    %c0_3 = arith.constant 0 : index
    %c0_4 = arith.constant 0 : index
    %3 = vector.load %arg3[%c0_3, %c0_4] : memref<1x64xf32, #tpu.memory_space<vmem>>, vector<1x64xf32>
    %4 = vector.broadcast %3 : vector<1x64xf32> to vector<8x64xf32>
    %5 = arith.addf %2, %4 : vector<8x64xf32>
    %6 = math.tanh %5 : vector<8x64xf32>
    %c0_5 = arith.constant 0 : index
    %c0_6 = arith.constant 0 : index
    %7 = vector.load %arg4[%c0_5, %c0_6] : memref<64x64xf32, #tpu.memory_space<vmem>>, vector<64x64xf32>
    %cst_7 = arith.constant dense<0.000000e+00> : vector<8x64xf32>
    %8 = tpu.matmul %6, %7, %cst_7 {dimension_numbers = #tpu.dot_dimension_numbers<[1], [0], [0], [1], [0, 0, 1, 1], [], []>} : vector<8x64xf32>, vector<64x64xf32>, vector<8x64xf32> -> vector<8x64xf32>
    %c0_8 = arith.constant 0 : index
    %c0_9 = arith.constant 0 : index
    %9 = vector.load %arg5[%c0_8, %c0_9] : memref<1x64xf32, #tpu.memory_space<vmem>>, vector<1x64xf32>
    %10 = vector.broadcast %9 : vector<1x64xf32> to vector<8x64xf32>
    %11 = arith.addf %8, %10 : vector<8x64xf32>
    %12 = math.tanh %11 : vector<8x64xf32>
    %c0_10 = arith.constant 0 : index
    %c0_11 = arith.constant 0 : index
    %13 = vector.load %arg6[%c0_10, %c0_11] : memref<1x64xf32, #tpu.memory_space<vmem>>, vector<1x64xf32>
    %14 = vector.broadcast %13 : vector<1x64xf32> to vector<8x64xf32>
    %15 = arith.mulf %12, %14 : vector<8x64xf32>
    %cst_12 = arith.constant dense<0.000000e+00> : vector<8xf32>
    %16 = vector.multi_reduction <add>, %15, %cst_12 [1] : vector<8x64xf32> to vector<8xf32>
    %17 = vector.shape_cast %16 : vector<8xf32> to vector<8x1xf32>
    %c0_13 = arith.constant 0 : index
    %c0_14 = arith.constant 0 : index
    %18 = vector.load %arg7[%c0_13, %c0_14] : memref<1x1xf32, #tpu.memory_space<vmem>>, vector<1x1xf32>
    %19 = vector.broadcast %18 : vector<1x1xf32> to vector<8x1xf32>
    %20 = arith.addf %17, %19 : vector<8x1xf32>
    %c0_15 = arith.constant 0 : index
    %c0_16 = arith.constant 0 : index
    %21 = vector.load %arg8[%c0_15, %c0_16] : memref<8x1xf32, #tpu.memory_space<vmem>>, vector<8x1xf32>
    tpu.vector_store %arg8[%c0_15, %c0_16], %20 {strides = array<i32>} : memref<8x1xf32, #tpu.memory_space<vmem>>, vector<8x1xf32>,
    return
  }
  func.func @transform_0(%arg0: i32) -> (i32, i32) {
    %c0_i32 = arith.constant 0 : i32
    %c0_i32_0 = arith.constant 0 : i32
    return %arg0, %c0_i32 : i32, i32
  }
  func.func @transform_1(%arg0: i32) -> (i32, i32) {
    %c0_i32 = arith.constant 0 : i32
    %c0_i32_0 = arith.constant 0 : i32
    %c0_i32_1 = arith.constant 0 : i32
    return %c0_i32, %c0_i32_0 : i32, i32
  }
  func.func @transform_2(%arg0: i32) -> (i32, i32) {
    %c0_i32 = arith.constant 0 : i32
    %c0_i32_0 = arith.constant 0 : i32
    %c0_i32_1 = arith.constant 0 : i32
    return %c0_i32, %c0_i32_0 : i32, i32
  }
  func.func @transform_3(%arg0: i32) -> (i32, i32) {
    %c0_i32 = arith.constant 0 : i32
    %c0_i32_0 = arith.constant 0 : i32
    %c0_i32_1 = arith.constant 0 : i32
    return %c0_i32, %c0_i32_0 : i32, i32
  }
  func.func @transform_4(%arg0: i32) -> (i32, i32) {
    %c0_i32 = arith.constant 0 : i32
    %c0_i32_0 = arith.constant 0 : i32
    %c0_i32_1 = arith.constant 0 : i32
    return %c0_i32, %c0_i32_0 : i32, i32
  }
  func.func @transform_5(%arg0: i32) -> (i32, i32) {
    %c0_i32 = arith.constant 0 : i32
    %c0_i32_0 = arith.constant 0 : i32
    %c0_i32_1 = arith.constant 0 : i32
    return %c0_i32, %c0_i32_0 : i32, i32
  }
  func.func @transform_6(%arg0: i32) -> (i32, i32) {
    %c0_i32 = arith.constant 0 : i32
    %c0_i32_0 = arith.constant 0 : i32
    %c0_i32_1 = arith.constant 0 : i32
    return %c0_i32, %c0_i32_0 : i32, i32
  }
  func.func @transform_7(%arg0: i32) -> (i32, i32) {
    %c0_i32 = arith.constant 0 : i32
    %c0_i32_0 = arith.constant 0 : i32
    return %arg0, %c0_i32 : i32, i32
  }
}

</mosaic_0001>

<bundles_post_ra>
// kernel: tpu_custom_call.1
= control target key start
LH: loop header
LB: loop body
LE: loop exit
PB: predicated region body
PF: predicated region fallthrough
CT: control target
= control target key end

     0   :  { %s526_s0 = inlined_call_operand.hbm [shape: f32[8,32], index: 0, kind: input, shape index: {}]   ;;  %s527_s1 = inlined_call_operand.hbm [shape: f32[32,64], index: 1, kind: input, shape index: {}]   ;;  %s528_s2 = inlined_call_operand.vmem [shape: f32[1,64], index: 2, kind: input, shape index: {}]   ;;  %s529_s3 = inlined_call_operand.hbm [shape: f32[64,64], index: 3, kind: input, shape index: {}]   ;;  %s530_s4 = inlined_call_operand.vmem [shape: f32[1,64], index: 4, kind: input, shape index: {}]   ;;  %s531_s5 = inlined_call_operand.vmem [shape: f32[1,64], index: 5, kind: input, shape index: {}]   ;;  %s532_s6 = inlined_call_operand.<no memory space> [shape: f32[1,1], index: 6, kind: input, shape index: {}]   ;;  %s533_s7 = inlined_call_operand.vmem [shape: f32[8,1], index: 7, kind: output, shape index: {}]  }
   0x1   :  { %v12_v0 = vstv %s532_s6 }
   0x2   :  { %13 = vst [vmem:[#allocation2] sm:$0x1] %v12_v0 }
   0x3   :  { %14 = vsyncpa [#allocation4], 0 }
   0x4   :  { %15 = vsyncpa [#allocation6], 0  ;;  %s421_s26 = smov [#allocation5]   ;;  %s351_s30 = scalar_lea.hbm %s527_s1, 512 }
   0x5   :  { %s31_s27 = sshll.u32 %s421_s26, 4  ;;  %p352_p0 = scmp.ne.s32.totalorder %s527_s1, %s351_s30  ;;  %s32_s27 = int_to_ptr.vmem [resolvable:$true] %s31_s27 }
   0x6   :  { %p355_p1 = scmp.lt.u32.totalorder %s351_s30, %s527_s1 }
   0x8   :  { %p357_p2 = pnand %p355_p1, %p352_p0 }
   0xa   :  { %360 = shalt.err (!%p357_p2)
}
   0xb   :  { %s361_s6 = scalar_lea.vmem %s32_s27, 512  ;;  %p366_p4 = scmp.lt.s32.totalorder %s32_s27, %s32_s27 }
   0xc   :  { %p362_p3 = scmp.ne.s32.totalorder %s32_s27, %s361_s6  ;;  %p367_p5 = scmp.lt.s32.totalorder %s361_s6, %s361_s6 }
   0xe   :  { %p368_p6 = por %p367_p5, %p366_p4 }
  0x10   :  { %p369_p7 = pnand %p368_p6, %p362_p3 }
  0x12   :  { %372 = shalt.err (!%p369_p7)
}
  0x13   :  { %s422_s12 = smov 128   ;;  %s423_s13 = smov 8  }
  0x14   :  { %37 = dma.hbm_to_vmem [thread:$0]  %s527_s1, 512, %s32_s27, [#allocation6], %s422_s12, %s422_s12, %s423_s13  }
  0x15   :  { %s424_s16 = smov [#allocation3]   ;;  %s425_s18 = smov [#allocation7]  }
  0x16   :  { %s22_s17 = sshll.u32 %s424_s16, 4  ;;  %s45_s19 = sshll.u32 %s425_s18, 4  ;;  %s23_s17 = int_to_ptr.vmem [resolvable:$true] %s22_s17  ;;  %s46_s19 = int_to_ptr.vmem [resolvable:$true] %s45_s19 }
  0x17   :  { %s373_s22 = scalar_lea.hbm %s526_s0, 128 }
  0x18   :  { %p374_p8 = scmp.ne.s32.totalorder %s526_s0, %s373_s22  ;;  %p377_p9 = scmp.lt.u32.totalorder %s373_s22, %s526_s0 }
  0x1a   :  { %p379_p10 = pnand %p377_p9, %p374_p8 }
  0x1c   :  { %382 = shalt.err (!%p379_p10)
}
  0x1d   :  { %s383_s1 = scalar_lea.vmem %s23_s17, 128  ;;  %p388_p12 = scmp.lt.s32.totalorder %s23_s17, %s23_s17 }
  0x1e   :  { %p384_p11 = scmp.ne.s32.totalorder %s23_s17, %s383_s1  ;;  %p389_p13 = scmp.lt.s32.totalorder %s383_s1, %s383_s1 }
  0x20   :  { %p390_p0 = por %p389_p13, %p388_p12 }
  0x22   :  { %p391_p1 = pnand %p390_p0, %p384_p11 }
  0x24   :  { %394 = shalt.err (!%p391_p1)
}
  0x25   :  { %25 = dma.hbm_to_vmem [thread:$0]  %s526_s0, 128, %s23_s17, [#allocation4]  }
  0x26   :  { %s395_s8 = scalar_lea.hbm %s529_s3, 1024 }
  0x27   :  { %p396_p2 = scmp.ne.s32.totalorder %s529_s3, %s395_s8  ;;  %p399_p3 = scmp.lt.u32.totalorder %s395_s8, %s529_s3 }
  0x29   :  { %p401_p4 = pnand %p399_p3, %p396_p2 }
  0x2b   :  { %404 = shalt.err (!%p401_p4)
}
  0x2c   :  { %s405_s14 = scalar_lea.vmem %s46_s19, 1024  ;;  %p410_p6 = scmp.lt.s32.totalorder %s46_s19, %s46_s19 }
  0x2d   :  { %p406_p5 = scmp.ne.s32.totalorder %s46_s19, %s405_s14  ;;  %p411_p7 = scmp.lt.s32.totalorder %s405_s14, %s405_s14 }
  0x2f   :  { %p412_p8 = por %p411_p7, %p410_p6 }
  0x31   :  { %p413_p9 = pnand %p412_p8, %p406_p5 }
  0x33   :  { %416 = shalt.err (!%p413_p9)
}
  0x34   :  { %51 = dma.hbm_to_vmem [thread:$0]  %s529_s3, 1024, %s46_s19, [#allocation6], %s422_s12, %s422_s12, %s423_s13  }
  0x35   :  { %417 = dma.done.wait [#allocation4], 128  }
  0x36   :  { %418 = vsyncadd [#allocation4], 4294967168 }
  0x37   :  { %419 = dma.done.wait [#allocation6], 1536  }
  0x38   :  { %420 = vsyncadd [#allocation6], 4294965760  ;;  %v426_v1 = vmov 0.0|0.0   ;;  %vm427_vm0 = vmmov 0   ;;  %v428_v2 = vmov 0.0   ;;  %v68_v3 = vld [vmem:[#allocation5] sm:$0xff] }
  0x39   :  { %321 = vmatprep.subr.bf16.mxu0 %v426_v1  ;;  %299 = vmatprep.mubr.msk.f32.mxu0 %vm427_vm0, %v428_v2  ;;  %v69_v4 = vld [vmem:[#allocation5 + $0x8] sm:$0xff]  ;;  %v70_v5 = vld [vmem:[#allocation5 + $0x10] sm:$0xff]  ;;  %v71_v7 = vld [vmem:[#allocation5 + $0x18] sm:$0xff]  ;;  %vm79_vm1 = vcmask 261120   ;;  %vm169_vm2 = vcmask 523264   ;;  %vm263_vm3 = vcmask 7168  }
  0x3a   :  { %327 = vmatprep.subr.bf16.mxu1 %v426_v1  ;;  %318 = vmatprep.mubr.msk.f32.mxu1 %vm427_vm0, %v428_v2  ;;  %v322_v6 = vpack.c.bf16 %v69_v4, %v68_v3  ;;  %v154_v8 = vld [vmem:[#allocation7] sm:$0xff]  ;;  %v155_v9 = vld [vmem:[#allocation7 + $0x8] sm:$0xff]  ;;  %v325_v10 = vpack.c.bf16 %v71_v7, %v70_v5  ;;  %v67_v12 = vld [vmem:[#allocation3] sm:$0xff] }
  0x3b   :  { %v328_v11 = vpack.c.bf16 %v155_v9, %v154_v8  ;;  %v156_v13 = vld [vmem:[#allocation7 + $0x10] sm:$0xff]  ;;  %v157_v14 = vld [vmem:[#allocation7 + $0x18] sm:$0xff]  ;;  %v158_v16 = vld [vmem:[#allocation7 + $0x20] sm:$0xff] }
  0x3c   :  { %323 = vmatpush3.bf16.msra.mxu0 %v322_v6  ;;  %v331_v15 = vpack.c.bf16 %v157_v14, %v156_v13  ;;  %v159_v17 = vld [vmem:[#allocation7 + $0x28] sm:$0xff]  ;;  %v160_v19 = vld [vmem:[#allocation7 + $0x30] sm:$0xff]  ;;  %v161_v20 = vld [vmem:[#allocation7 + $0x38] sm:$0xff] }
  0x3d   :  { %324 = vmatprep.subr.bf16.mxu0 %v426_v1  ;;  %329 = vmatpush3.bf16.msra.mxu1 %v328_v11  ;;  %v334_v18 = vpack.c.bf16 %v159_v17, %v158_v16  ;;  %v337_v21 = vpack.c.bf16 %v161_v20, %v160_v19  ;;  %v271_v22 = vld [vmem:[%s528_s2] ss:$0 sm:$0xff] }
  0x3e   :  { %330 = vmatprep.subr.bf16.mxu1 %v426_v1  ;;  %v273_v27 = vld [vmem:[%s530_s4] ss:$0 sm:$0xff] }
  0x3f   :  { %v275_v31 = vld [vmem:[%s531_s5] ss:$0 sm:$0xff] }
  0x40   :  { %326 = vmatpush3.bf16.msra.mxu0 %v325_v10  ;;  %v276_v35 = vld [vmem:[#allocation2] ss:$0 sm:$0xff] }
  0x41   :  { %332 = vmatpush3.bf16.msra.mxu1 %v331_v15 }
  0x42   :  { %333 = vmatprep.subr.bf16.mxu1 %v426_v1 }
  0x43   :  { %300 = vmatmul.mubr.msk.f32.vlgmr.msra.gmra.mrb[0].mxu0 %vm79_vm1, %v67_v12 }
  0x45   :  { %335 = vmatpush3.bf16.msra.mxu1 %v334_v18 }
  0x46   :  { %336 = vmatprep.subr.bf16.mxu1 %v426_v1 }
  0x49   :  { %338 = vmatpush3.bf16.msra.mxu1 %v337_v21 }
 0x116   :  { %v149_v23 = vpop.f32.mrb[0].mxu0 }
 0x117   :  { %v150_v24 = vadd.f32 %v271_v22, %v149_v23  ;;  %v301_v25 = vpop.f32.mrb[1].mxu0 }
 0x119   :  { %347 = vtanh.f32 %v150_v24 }
 0x123   :  { %v348_v26 = vpop.eup %347 }
 0x124   :  { %319 = vmatmul.mubr.msk.f32.vlgmr.msra.gmra.mrb[0].mxu1 %vm169_vm2, %v348_v26 }
 0x1f7   :  { %v239_v28 = vpop.f32.mrb[0].mxu1 }
 0x1f8   :  { %v240_v29 = vadd.f32 %v273_v27, %v239_v28  ;;  %v320_v30 = vpop.f32.mrb[1].mxu1 }
 0x1fa   :  { %349 = vtanh.f32 %v240_v29 }
 0x204   :  { %v350_v32 = vpop.eup %349 }
 0x205   :  { %v251_v33 = vmul.f32 %v350_v32, %v275_v31 }
 0x207   :  { %v252_v34 = vsel %vm169_vm2, %v251_v33, 0.0 }
 0x208   :  { %253 = vadd.xlane.f32.xlu0 %v252_v34 }
 0x295   :  { %v254_v36 = vpop.xlane.xlu0 %253 }
 0x296   :  { %v262_v37 = vadd.f32 %v276_v35, %v254_v36 }
 0x298   :  { %264 = vst.msk [vmem:[%s533_s7] sm:$0xff] %vm263_vm3, %v262_v37 }
 0x299   :  { %269 = vsyncpa [#allocation4], 1 }
 0x29a   :  { %270 = vsyncpa [#allocation6], 1 }

</bundles_post_ra>
